<compile_context>
chip_gen: v7x
topology: tpu7x:2x2x1
jax: 0.10.0
libtpu: 0.0.40
codegen_flags: <defaults>
</compile_context>

<pallas_src>
import jax
import jax.numpy as jnp
from jax.experimental import pallas as pl
from jax.experimental.pallas import tpu as pltpu


def gen_kernel(xT_ref, w1_ref, b1_ref, w2_ref, b2_ref, w3_ref, b3_ref, oT_ref):
    """One batch tile of the fused 3-layer MLP, feature-major layout.

    xT_ref : [d_in,  bt]  (compute dtype, batch on lanes)
    w*_ref : [out, in]    (compute dtype, PyTorch layout)
    b*_ref : [out, 1]     (f32)
    oT_ref : [d_out, bt]
    """
    cdt = w1_ref.dtype  # MXU compute dtype (bf16 or f32)

    # Layer 1: h1 = relu(W1 @ x^T + b1)           -> [h1, bt]
    h1 = jnp.dot(w1_ref[...], xT_ref[...], preferred_element_type=jnp.float32)
    h1 = jnp.maximum(h1 + b1_ref[...], 0.0)

    # Layer 2: h2 = relu(W2 @ h1 + b2)            -> [h2, bt]
    h2 = jnp.dot(w2_ref[...], h1.astype(cdt), preferred_element_type=jnp.float32)
    h2 = jnp.maximum(h2 + b2_ref[...], 0.0)

    # Layer 3: y = W3 @ h2 + b3                   -> [d_out, bt]
    y = jnp.dot(w3_ref[...], h2.astype(cdt), preferred_element_type=jnp.float32)
    oT_ref[...] = (y + b3_ref[...]).astype(oT_ref.dtype)


def _pick_batch_tile(B):
    """Largest lane-dense tile (<=2048) that still leaves >=2 grid steps so
    both v7x TensorCores can be fed; otherwise a single full-batch step."""
    if B % 128 != 0:
        return B
    for cand in (2048, 1024, 512, 256, 128):
        if B % cand == 0 and B // cand >= 2:
            return cand
    return B


def gen_forward(x, params, *, batch_tile=None, compute_dtype=jnp.bfloat16):
    """Fused 3-layer MLP forward. x: [B, d_in] -> [B, d_out].

    params = ((W1,b1),(W2,b2),(W3,b3)) with W_i in PyTorch [out, in] layout,
    b_i of shape [out].
    """
    (w1, b1), (w2, b2), (w3, b3) = params
    B_orig, d_in = x.shape
    h1, h2, d_out = w1.shape[0], w2.shape[0], w3.shape[0]
    assert d_in == w1.shape[1], "input feature mismatch"
    assert w2.shape[1] == h1 and w3.shape[1] == h2, "hidden dims mismatch"
    out_dtype = x.dtype

    # Pad batch up to a multiple of 128 for dense lanes (padded rows discarded).
    B = B_orig
    if B % 128 != 0:
        B = 128 * pl.cdiv(B, 128)
        x = jnp.pad(x, ((0, B - B_orig), (0, 0)))

    # Batch-on-lanes: transpose activations; cast MXU operands; biases stay f32.
    xT = x.T.astype(compute_dtype)                                    # [d_in, B]
    w1c, w2c, w3c = (w.astype(compute_dtype) for w in (w1, w2, w3))
    b1c, b2c, b3c = (b.reshape(-1, 1).astype(jnp.float32) for b in (b1, b2, b3))

    if batch_tile is None:
        batch_tile = _pick_batch_tile(B)
    assert B % batch_tile == 0
    assert batch_tile % 128 == 0 or batch_tile == B

    itemsize = jnp.dtype(compute_dtype).itemsize
    n_weights = w1.size + w2.size + w3.size
    n_bias = b1.size + b2.size + b3.size
    cost = pl.CostEstimate(
        flops=2 * B * (d_in * h1 + h1 * h2 + h2 * d_out),
        transcendentals=0,
        bytes_accessed=int(xT.size * itemsize + n_weights * itemsize
                           + n_bias * 4
                           + B * d_out * jnp.dtype(out_dtype).itemsize),
    )

    full = lambda shape: pl.BlockSpec(shape, lambda i: (0, 0))

    outT = pl.pallas_call(
        gen_kernel,
        out_shape=jax.ShapeDtypeStruct((d_out, B), out_dtype),
        grid_spec=pltpu.PrefetchScalarGridSpec(
            num_scalar_prefetch=0,
            grid=(B // batch_tile,),
            in_specs=[
                pl.BlockSpec((d_in, batch_tile), lambda i: (0, i)),   # x^T tile
                full((h1, d_in)), full((h1, 1)),                      # layer 1
                full((h2, h1)), full((h2, 1)),                        # layer 2
                full((d_out, h2)), full((d_out, 1)),                  # layer 3
            ],
            out_specs=pl.BlockSpec((d_out, batch_tile), lambda i: (0, i)),
        ),
        compiler_params=pltpu.CompilerParams(
            dimension_semantics=("parallel",)),
        cost_estimate=cost,
    )(xT, w1c, b1c, w2c, b2c, w3c, b3c)

    return outT.T[:B_orig]                                            # [B, d_out]


def init_linear(key, fan_in, fan_out, dtype=jnp.float32):
    """PyTorch nn.Linear default init: U(-1/sqrt(fan_in), 1/sqrt(fan_in)).
    W: [fan_out, fan_in], b: [fan_out] (PyTorch layout)."""
    kw, kb = jax.random.split(key)
    bound = 1.0 / (fan_in ** 0.5)
    w = jax.random.uniform(kw, (fan_out, fan_in), dtype, -bound, bound)
    b = jax.random.uniform(kb, (fan_out,), dtype, -bound, bound)
    return w, b


def gen_reference(x, params, compute_dtype=None):
    """Pure-JAX reference. If compute_dtype is given, matmul operands are
    rounded to it first (to mirror the kernel's MXU input precision)."""
    cast = (lambda a: a) if compute_dtype is None else (
        lambda a: a.astype(compute_dtype).astype(jnp.float32))
    (w1, b1), (w2, b2), (w3, b3) = params
    h = jnp.maximum(jnp.dot(cast(x), cast(w1).T,
                            preferred_element_type=jnp.float32) + b1, 0.0)
    h = jnp.maximum(jnp.dot(cast(h), cast(w2).T,
                            preferred_element_type=jnp.float32) + b2, 0.0)
    return jnp.dot(cast(h), cast(w3).T,
                   preferred_element_type=jnp.float32) + b3


if __name__ == "__main__":
    # Module config: GEN(input_size=16, hiddens=[64, 32], output_size=8)
    input_size, hiddens, output_size = 16, [64, 32], 8
    dim_list = [input_size, *hiddens, output_size]
    B = 128

    key = jax.random.PRNGKey(0)
    k_x, k1, k2, k3 = jax.random.split(key, 4)

    x = jax.random.normal(k_x, (B, input_size), jnp.float32)
    params = (
        init_linear(k1, dim_list[0], dim_list[1]),
        init_linear(k2, dim_list[1], dim_list[2]),
        init_linear(k3, dim_list[2], dim_list[3]),
    )

    out = gen_forward(x, params)
    out = jax.block_until_ready(out)
    assert out.shape == (B, output_size)

    # Tight check vs a reference that mirrors the kernel's bf16 MXU operands.
    ref_bf16 = gen_reference(x, params, compute_dtype=jnp.bfloat16)
    assert jnp.allclose(out, ref_bf16, atol=5e-3, rtol=5e-3), \
        "mismatch vs bf16-aware reference"

    # Loose check vs the pure-f32 semantics of the original PyTorch module.
    ref_f32 = gen_reference(x, params)
    assert jnp.allclose(out, ref_f32, atol=5e-2, rtol=5e-2), \
        "mismatch vs f32 reference"

    print("KERNEL_OK")
</pallas_src>

<mosaic_0001>
module attributes {stable_mosaic.version = 11 : i64} {
  func.func @gen_kernel(%arg0: i32, %arg1: memref<16x128xbf16, #tpu.memory_space<vmem>>, %arg2: memref<64x16xbf16, #tpu.memory_space<vmem>>, %arg3: memref<64x1xf32, #tpu.memory_space<vmem>>, %arg4: memref<32x64xbf16, #tpu.memory_space<vmem>>, %arg5: memref<32x1xf32, #tpu.memory_space<vmem>>, %arg6: memref<8x32xbf16, #tpu.memory_space<vmem>>, %arg7: memref<8x1xf32, #tpu.memory_space<vmem>>, %arg8: memref<8x128xf32, #tpu.memory_space<vmem>>) attributes {dimension_semantics = [#tpu.dimension_semantics<parallel>], iteration_bounds = array<i64: 1>, scalar_prefetch = 0 : i64, scratch_operands = 0 : i64, tpu.core_type = #tpu.core_type<tc>, window_params = [{transform_indices = @transform_0, window_bounds = array<i64: 16, 128>}, {pipeline_mode = #tpu.pipeline_mode<synchronous>, transform_indices = @transform_1, window_bounds = array<i64: 64, 16>}, {pipeline_mode = #tpu.pipeline_mode<synchronous>, transform_indices = @transform_2, window_bounds = array<i64: 64, 1>}, {pipeline_mode = #tpu.pipeline_mode<synchronous>, transform_indices = @transform_3, window_bounds = array<i64: 32, 64>}, {pipeline_mode = #tpu.pipeline_mode<synchronous>, transform_indices = @transform_4, window_bounds = array<i64: 32, 1>}, {pipeline_mode = #tpu.pipeline_mode<synchronous>, transform_indices = @transform_5, window_bounds = array<i64: 8, 32>}, {pipeline_mode = #tpu.pipeline_mode<synchronous>, transform_indices = @transform_6, window_bounds = array<i64: 8, 1>}, {transform_indices = @transform_7, window_bounds = array<i64: 8, 128>}]} {
    %c0 = arith.constant 0 : index
    %c0_0 = arith.constant 0 : index
    %0 = vector.load %arg2[%c0, %c0_0] : memref<64x16xbf16, #tpu.memory_space<vmem>>, vector<64x16xbf16>
    %c0_1 = arith.constant 0 : index
    %c0_2 = arith.constant 0 : index
    %1 = vector.load %arg1[%c0_1, %c0_2] : memref<16x128xbf16, #tpu.memory_space<vmem>>, vector<16x128xbf16>
    %cst = arith.constant dense<0.000000e+00> : vector<64x128xf32>
    %2 = tpu.matmul %0, %1, %cst {dimension_numbers = #tpu.dot_dimension_numbers<[1], [0], [0], [1], [0, 0, 1, 1], [], []>} : vector<64x16xbf16>, vector<16x128xbf16>, vector<64x128xf32> -> vector<64x128xf32>
    %c0_3 = arith.constant 0 : index
    %c0_4 = arith.constant 0 : index
    %3 = vector.load %arg3[%c0_3, %c0_4] : memref<64x1xf32, #tpu.memory_space<vmem>>, vector<64x1xf32>
    %4 = vector.broadcast %3 : vector<64x1xf32> to vector<64x128xf32>
    %5 = arith.addf %2, %4 : vector<64x128xf32>
    %cst_5 = arith.constant 0.000000e+00 : f32
    %6 = vector.broadcast %cst_5 : f32 to vector<64x128xf32>
    %7 = arith.maximumf %5, %6 : vector<64x128xf32>
    %c0_6 = arith.constant 0 : index
    %c0_7 = arith.constant 0 : index
    %8 = vector.load %arg4[%c0_6, %c0_7] : memref<32x64xbf16, #tpu.memory_space<vmem>>, vector<32x64xbf16>
    %9 = arith.truncf %7 : vector<64x128xf32> to vector<64x128xbf16>
    %cst_8 = arith.constant dense<0.000000e+00> : vector<32x128xf32>
    %10 = tpu.matmul %8, %9, %cst_8 {dimension_numbers = #tpu.dot_dimension_numbers<[1], [0], [0], [1], [0, 0, 1, 1], [], []>} : vector<32x64xbf16>, vector<64x128xbf16>, vector<32x128xf32> -> vector<32x128xf32>
    %c0_9 = arith.constant 0 : index
    %c0_10 = arith.constant 0 : index
    %11 = vector.load %arg5[%c0_9, %c0_10] : memref<32x1xf32, #tpu.memory_space<vmem>>, vector<32x1xf32>
    %12 = vector.broadcast %11 : vector<32x1xf32> to vector<32x128xf32>
    %13 = arith.addf %10, %12 : vector<32x128xf32>
    %cst_11 = arith.constant 0.000000e+00 : f32
    %14 = vector.broadcast %cst_11 : f32 to vector<32x128xf32>
    %15 = arith.maximumf %13, %14 : vector<32x128xf32>
    %c0_12 = arith.constant 0 : index
    %c0_13 = arith.constant 0 : index
    %16 = vector.load %arg6[%c0_12, %c0_13] : memref<8x32xbf16, #tpu.memory_space<vmem>>, vector<8x32xbf16>
    %17 = arith.truncf %15 : vector<32x128xf32> to vector<32x128xbf16>
    %cst_14 = arith.constant dense<0.000000e+00> : vector<8x128xf32>
    %18 = tpu.matmul %16, %17, %cst_14 {dimension_numbers = #tpu.dot_dimension_numbers<[1], [0], [0], [1], [0, 0, 1, 1], [], []>} : vector<8x32xbf16>, vector<32x128xbf16>, vector<8x128xf32> -> vector<8x128xf32>
    %c0_15 = arith.constant 0 : index
    %c0_16 = arith.constant 0 : index
    %19 = vector.load %arg7[%c0_15, %c0_16] : memref<8x1xf32, #tpu.memory_space<vmem>>, vector<8x1xf32>
    %20 = vector.broadcast %19 : vector<8x1xf32> to vector<8x128xf32>
    %21 = arith.addf %18, %20 : vector<8x128xf32>
    %c0_17 = arith.constant 0 : index
    %c0_18 = arith.constant 0 : index
    %22 = vector.load %arg8[%c0_17, %c0_18] : memref<8x128xf32, #tpu.memory_space<vmem>>, vector<8x128xf32>
    tpu.vector_store %arg8[%c0_17, %c0_18], %21 {strides = array<i32>} : memref<8x128xf32, #tpu.memory_space<vmem>>, vector<8x128xf32>,
    return
  }
  func.func @transform_0(%arg0: i32) -> (i32, i32) {
    %c0_i32 = arith.constant 0 : i32
    %c0_i32_0 = arith.constant 0 : i32
    return %c0_i32, %arg0 : i32, i32
  }
  func.func @transform_1(%arg0: i32) -> (i32, i32) {
    %c0_i32 = arith.constant 0 : i32
    %c0_i32_0 = arith.constant 0 : i32
    %c0_i32_1 = arith.constant 0 : i32
    return %c0_i32, %c0_i32_0 : i32, i32
  }
  func.func @transform_2(%arg0: i32) -> (i32, i32) {
    %c0_i32 = arith.constant 0 : i32
    %c0_i32_0 = arith.constant 0 : i32
    %c0_i32_1 = arith.constant 0 : i32
    return %c0_i32, %c0_i32_0 : i32, i32
  }
  func.func @transform_3(%arg0: i32) -> (i32, i32) {
    %c0_i32 = arith.constant 0 : i32
    %c0_i32_0 = arith.constant 0 : i32
    %c0_i32_1 = arith.constant 0 : i32
    return %c0_i32, %c0_i32_0 : i32, i32
  }
  func.func @transform_4(%arg0: i32) -> (i32, i32) {
    %c0_i32 = arith.constant 0 : i32
    %c0_i32_0 = arith.constant 0 : i32
    %c0_i32_1 = arith.constant 0 : i32
    return %c0_i32, %c0_i32_0 : i32, i32
  }
  func.func @transform_5(%arg0: i32) -> (i32, i32) {
    %c0_i32 = arith.constant 0 : i32
    %c0_i32_0 = arith.constant 0 : i32
    %c0_i32_1 = arith.constant 0 : i32
    return %c0_i32, %c0_i32_0 : i32, i32
  }
  func.func @transform_6(%arg0: i32) -> (i32, i32) {
    %c0_i32 = arith.constant 0 : i32
    %c0_i32_0 = arith.constant 0 : i32
    %c0_i32_1 = arith.constant 0 : i32
    return %c0_i32, %c0_i32_0 : i32, i32
  }
  func.func @transform_7(%arg0: i32) -> (i32, i32) {
    %c0_i32 = arith.constant 0 : i32
    %c0_i32_0 = arith.constant 0 : i32
    return %c0_i32, %arg0 : i32, i32
  }
}

</mosaic_0001>

<bundles_post_ra>
// kernel: tpu_custom_call.1
= control target key start
LH: loop header
LB: loop body
LE: loop exit
PB: predicated region body
PF: predicated region fallthrough
CT: control target
= control target key end

     0   :  { %vm112_vm0 = vcmask 130048   ;;  %v463_v3 = vmov 0   ;;  %s588_s0 = inlined_call_operand.vmem [shape: bf16[16,128], index: 0, kind: input, shape index: {}]   ;;  %s589_s1 = inlined_call_operand.vmem [shape: bf16[64,16], index: 1, kind: input, shape index: {}]   ;;  %s590_s2 = inlined_call_operand.vmem [shape: f32[64,1], index: 2, kind: input, shape index: {}]   ;;  %s591_s3 = inlined_call_operand.vmem [shape: bf16[32,64], index: 3, kind: input, shape index: {}]   ;;  %s592_s4 = inlined_call_operand.vmem [shape: f32[32,1], index: 4, kind: input, shape index: {}]   ;;  %s593_s5 = inlined_call_operand.vmem [shape: bf16[8,32], index: 5, kind: input, shape index: {}]   ;;  %s594_s6 = inlined_call_operand.vmem [shape: f32[8,1], index: 6, kind: input, shape index: {}]   ;;  %s595_s7 = inlined_call_operand.hbm [shape: f32[8,128], index: 7, kind: output, shape index: {}]  }
   0x1   :  { %v432_v0 = vld [vmem:[%s588_s0] sm:$0xff]   ;;  %v434_v2 = vld [vmem:[%s589_s1 + $0x8] sm:$0xff]   ;;  %430 = vset.pattern.permute.xlu0 %v463_v3  ;;  %v435_v4 = vld [vmem:[%s589_s1 + $0x10] sm:$0xff]   ;;  %431 = vset.pattern.permute.xlu1 %v463_v3 }
   0x2   :  { %v433_v1 = vld [vmem:[%s589_s1] sm:$0xff]   ;;  %396 = vmatprep.subr.bf16.mxu0 %v432_v0  ;;  %v40_v6 = vld [vmem:[%s590_s2 + $0x10] sm:$0xff]  ;;  %v39_v7 = vld [vmem:[%s590_s2 + $0x8] sm:$0xff] }
   0x3   :  { %397 = vmatpush3.bf16.msra.mxu0 %v432_v0  ;;  %398 = vmatprep.mubr.msk.bf16.mxu0 %vm112_vm0, %v433_v1  ;;  %v38_v5 = vld [vmem:[%s590_s2] sm:$0xff]  ;;  %v41_v8 = vld [vmem:[%s590_s2 + $0x18] sm:$0xff] }
   0x4   :  { %48 = vperm.xlu0 %430, %v38_v5   ;;  %58 = vperm.xlu1 %431, %v40_v6   ;;  %v436_v9 = vld [vmem:[%s589_s1 + $0x18] sm:$0xff]  }
   0x6   :  { %399 = vmatmul.mubr.msk.bf16.vlgmr.msra.gmra.mrb[0].mxu0 %vm112_vm0, %v434_v2 }
   0x7   :  { %402 = vmatprep.mubr.msk.bf16.mxu0 %vm112_vm0, %v435_v4 }
   0x8   :  { %53 = vperm.xlu0 %430, %v39_v7  }
   0x9   :  { %12 = vsyncpa [#allocation3], 0  ;;  %v42_v10 = vld [vmem:[%s590_s2 + $0x20] sm:$0xff]  ;;  %63 = vperm.xlu1 %431, %v41_v8   ;;  %v43_v11 = vld [vmem:[%s590_s2 + $0x28] sm:$0xff]  ;;  %vm240_vm1 = vcmask 523264   ;;  %v464_v57 = vmov 0.0  }
   0xa   :  { %v44_v12 = vld [vmem:[%s590_s2 + $0x30] sm:$0xff]  ;;  %v45_v13 = vld [vmem:[%s590_s2 + $0x38] sm:$0xff]  ;;  %v206_v14 = vld [vmem:[%s592_s4] sm:$0xff]  ;;  %418 = vmatprep.subr.bf16.mxu0 %v464_v57  ;;  %vm465_vm2 = vmmov 0   ;;  %vm309_vm3 = vcmask 261120   ;;  %s466_s13 = smov [#allocation2]  }
   0xb   :  { %v207_v15 = vld [vmem:[%s592_s4 + $0x8] sm:$0xff]  ;;  %v208_v16 = vld [vmem:[%s592_s4 + $0x10] sm:$0xff]  ;;  %v209_v17 = vld [vmem:[%s592_s4 + $0x18] sm:$0xff]  ;;  %s360_s14 = sshll.u32 %s466_s13, 4  ;;  %s361_s14 = int_to_ptr.vmem [resolvable:$true] %s360_s14 }
   0xc   :  { %68 = vperm.xlu0 %430, %v42_v10   ;;  %v303_v18 = vld [vmem:[%s594_s6] sm:$0xff]  ;;  %v438_v56 = vld [vmem:[%s591_s3 + $0x8] sm:$0xff]   ;;  %s439_s15 = scalar_lea.vmem %s361_s14, 128  ;;  %p444_p1 = scmp.lt.s32.totalorder %s361_s14, %s361_s14 }
   0xd   :  { %73 = vperm.xlu1 %431, %v43_v11   ;;  %v437_v19 = vld [vmem:[%s591_s3] sm:$0xff]   ;;  %p440_p0 = scmp.ne.s32.totalorder %s361_s14, %s439_s15  ;;  %p445_p2 = scmp.lt.s32.totalorder %s439_s15, %s439_s15 }
   0xe   :  { %403 = vmatmul.mubr.msk.bf16.gmra.mrb[4].mxu0 %vm112_vm0, %v436_v9  ;;  %414 = vmatprep.mubr.msk.bf16.mxu1 %vm240_vm1, %v437_v19 }
   0xf   :  { %422 = vmatprep.mubr.msk.bf16.mxu0 %vm465_vm2, %v464_v57  ;;  %p446_p3 = por %p445_p2, %p444_p1 }
  0x10   :  { %78 = vperm.xlu0 %430, %v44_v12   ;;  %v300_v12 = vld [vmem:[%s593_s5] sm:$0xf] }
  0x11   :  { %83 = vperm.xlu1 %431, %v45_v13   ;;  %p447_p4 = pnand %p446_p3, %p440_p0 }
  0x14   :  { %212 = vperm.xlu0 %430, %v206_v14  }
  0x15   :  { %217 = vperm.xlu1 %431, %v207_v15  }
  0x18   :  { %222 = vperm.xlu0 %430, %v208_v16  }
  0x19   :  { %227 = vperm.xlu1 %431, %v209_v17  }
  0x1c   :  { %306 = vperm.xlu0 %430, %v303_v18  }
  0x83   :  { %v49_v20 = vpop.permute.xlu0 %48  ;;  %v59_v21 = vpop.permute.xlu1 %58 }
  0x87   :  { %v54_v22 = vpop.permute.xlu0 %53 }
  0x88   :  { %v64_v23 = vpop.permute.xlu1 %63 }
  0x8b   :  { %v69_v27 = vpop.permute.xlu0 %68 }
  0x8c   :  { %v74_v32 = vpop.permute.xlu1 %73 }
  0x8f   :  { %v79_v39 = vpop.permute.xlu0 %78 }
  0x90   :  { %v84_v44 = vpop.permute.xlu1 %83 }
  0x93   :  { %v213_v58 = vpop.permute.xlu0 %212 }
  0x94   :  { %v218_v59 = vpop.permute.xlu1 %217 }
  0x97   :  { %v223_v60 = vpop.permute.xlu0 %222 }
  0x98   :  { %v228_v0 = vpop.permute.xlu1 %227 }
  0x9b   :  { %v307_v13 = vpop.permute.xlu0 %306 }
  0xd9   :  { %v400_v24 = vpop.f32.mrb[0].mxu0 }
  0xda   :  { %v168_v25 = vadd.f32 %v400_v24, %v59_v21  ;;  %v159_v26 = vpop.f32.mrb[1].mxu0 }
  0xdb   :  { %v160_v28 = vadd.f32 %v159_v26, %v49_v20  ;;  %v401_v29 = vpop.f32.mrb[2].mxu0 }
  0xdc   :  { %v171_v30 = vadd.f32 %v401_v29, %v64_v23  ;;  %v162_v31 = vpop.f32.mrb[3].mxu0  ;;  %v192_v34 = vmax.f32 %v168_v25, 0.0 }
  0xdd   :  { %v163_v33 = vadd.f32 %v162_v31, %v54_v22  ;;  %v190_v36 = vmax.f32 %v160_v28, 0.0 }
  0xde   :  { %v193_v35 = vmax.f32 %v171_v30, 0.0 }
  0xdf   :  { %v191_v37 = vmax.f32 %v163_v33, 0.0 }
  0xe0   :  { %v203_v38 = vpack.c.bf16 %v193_v35, %v192_v34 }
  0xe1   :  { %v404_v40 = vpop.f32.mrb[4].mxu0  ;;  %v202_v41 = vpack.c.bf16 %v191_v37, %v190_v36 }
  0xe2   :  { %v184_v42 = vadd.f32 %v404_v40, %v79_v39  ;;  %v175_v43 = vpop.f32.mrb[5].mxu0 }
  0xe3   :  { %v176_v45 = vadd.f32 %v175_v43, %v69_v27  ;;  %v405_v46 = vpop.f32.mrb[6].mxu0  ;;  %406 = vmatprep.subr.bf16.mxu1 %v202_v41 }
  0xe4   :  { %v187_v47 = vadd.f32 %v405_v46, %v84_v44  ;;  %v178_v48 = vpop.f32.mrb[7].mxu0  ;;  %407 = vmatpush3.bf16.msra.mxu1 %v202_v41  ;;  %v196_v50 = vmax.f32 %v184_v42, 0.0 }
  0xe5   :  { %v179_v49 = vadd.f32 %v178_v48, %v74_v32  ;;  %408 = vmatprep.subr.bf16.mxu1 %v203_v38  ;;  %v194_v52 = vmax.f32 %v176_v45, 0.0 }
  0xe6   :  { %v197_v51 = vmax.f32 %v187_v47, 0.0 }
  0xe7   :  { %v195_v53 = vmax.f32 %v179_v49, 0.0 }
  0xe8   :  { %v205_v54 = vpack.c.bf16 %v197_v51, %v196_v50  ;;  %409 = vmatpush3.bf16.msra.mxu1 %v203_v38 }
  0xe9   :  { %v204_v55 = vpack.c.bf16 %v195_v53, %v194_v52 }
  0xeb   :  { %410 = vmatprep.subr.bf16.mxu1 %v204_v55 }
  0xec   :  { %411 = vmatpush3.bf16.msra.mxu1 %v204_v55 }
  0xed   :  { %412 = vmatprep.subr.bf16.mxu1 %v205_v54 }
  0xf0   :  { %413 = vmatpush3.bf16.msra.mxu1 %v205_v54 }
  0xf3   :  { %415 = vmatmul.mubr.msk.bf16.vlgmr.msra.gmra.mrb[0].mxu1 %vm240_vm1, %v438_v56 }
 0x1c6   :  { %v416_v61 = vpop.f32.mrb[0].mxu1 }
 0x1c7   :  { %v290_v62 = vadd.f32 %v416_v61, %v223_v60  ;;  %v281_v63 = vpop.f32.mrb[1].mxu1 }
 0x1c8   :  { %v282_v1 = vadd.f32 %v281_v63, %v213_v58  ;;  %v417_v2 = vpop.f32.mrb[2].mxu1 }
 0x1c9   :  { %v293_v3 = vadd.f32 %v417_v2, %v228_v0  ;;  %v284_v4 = vpop.f32.mrb[3].mxu1  ;;  %v298_v6 = vmax.f32 %v290_v62, 0.0 }
 0x1ca   :  { %v285_v5 = vadd.f32 %v284_v4, %v218_v59  ;;  %v296_v8 = vmax.f32 %v282_v1, 0.0 }
 0x1cb   :  { %v299_v7 = vmax.f32 %v293_v3, 0.0 }
 0x1cc   :  { %v297_v9 = vmax.f32 %v285_v5, 0.0 }
 0x1cd   :  { %v302_v10 = vpack.c.bf16 %v299_v7, %v298_v6 }
 0x1ce   :  { %v301_v11 = vpack.c.bf16 %v297_v9, %v296_v8 }
 0x1d0   :  { %419 = vmatpush3.bf16.msra.mxu0 %v301_v11 }
 0x1d1   :  { %420 = vmatprep.subr.bf16.mxu0 %v464_v57 }
 0x1d4   :  { %421 = vmatpush3.bf16.msra.mxu0 %v302_v10 }
 0x1d7   :  { %423 = vmatmul.mubr.msk.bf16.vlgmr.msra.gmra.mrb[8].mxu0 %vm309_vm3, %v300_v12 }
 0x2aa   :  { %v347_v14 = vpop.f32.mrb[8].mxu0 }
 0x2ab   :  { %v348_v15 = vadd.f32 %v347_v14, %v307_v13  ;;  %v424_v16 = vpop.f32.mrb[9].mxu0 }
 0x2ac   :  { %v350_v17 = vpop.f32.mrb[10].mxu0 }
 0x2ad   :  { %353 = vst [vmem:[#allocation2] sm:$0xff] %v348_v15  ;;  %v425_v18 = vpop.f32.mrb[11].mxu0 }
 0x2ae   :  { %450 = shalt.err (!%p447_p4)
}
 0x2af   :  { %s451_s17 = scalar_lea.hbm %s595_s7, 128 }
 0x2b0   :  { %p452_p5 = scmp.ne.s32.totalorder %s595_s7, %s451_s17  ;;  %p455_p6 = scmp.lt.u32.totalorder %s451_s17, %s595_s7 }
 0x2b2   :  { %p457_p7 = pnand %p455_p6, %p452_p5 }
 0x2b4   :  { %460 = shalt.err (!%p457_p7)
}
 0x2b5   :  { %363 = dma.vmem_to_hbm [thread:$0]  %s361_s14, 128, %s595_s7, [#allocation3]  }
 0x2b6   :  { %461 = dma.done.wait [#allocation3], 128  }
 0x2b7   :  { %462 = vsyncadd [#allocation3], 4294967168 }
 0x2b8   :  { %367 = vsyncpa [#allocation3], 1 }

</bundles_post_ra>
